<compile_context>
chip_gen: v7x
topology: tpu7x:2x2x1
jax: 0.10.0
libtpu: 0.0.40
codegen_flags: <defaults>
</compile_context>

<pallas_src>
import functools

import jax
import jax.numpy as jnp
import numpy as np
from jax.experimental import pallas as pl
from jax.experimental.pallas import tpu as pltpu


def _sce_kernel(pred_ref, labels_ref, out_ref, acc_ref, *, n_total, alpha, rce_scale):
    """One batch tile of the SCE loss.

    pred_ref:   (TN, C) logits in their native row-major layout (f32 or bf16)
    labels_ref: (1, TN) integer class indices (any int dtype; upcast here)
    out_ref:    (1, 1)  f32 scalar loss in SMEM, written only in the last step
    acc_ref:    (1, TN) f32 per-lane loss accumulator, resident across the grid
    """
    pid = pl.program_id(0)
    last = pl.num_programs(0) - 1

    x = pred_ref[...]                                   # (TN, C), native layout
    tn, c = x.shape
    labels = labels_ref[...].astype(jnp.int32)          # (1, TN)

    # Class-major (C, TN) tile via the MXU: xt[c, j] = sum_k eye[c, k] * x[j, k].
    # This is the standard NT (q @ k.T) contraction; HIGHEST precision makes the
    # identity contraction reproduce f32 logits exactly, and bf16 inputs are
    # upcast exactly by the f32 accumulate.
    eye = (jax.lax.broadcasted_iota(jnp.int32, (c, c), 0)
           == jax.lax.broadcasted_iota(jnp.int32, (c, c), 1)).astype(x.dtype)
    xt = jax.lax.dot_general(
        eye, x, (((1,), (1,)), ((), ())),
        precision=jax.lax.Precision.HIGHEST,
        preferred_element_type=jnp.float32)              # (C, TN) f32

    # Mask for the (possibly partial) last tile along the batch axis.
    col = pid * tn + jax.lax.broadcasted_iota(jnp.int32, (1, tn), 1)
    valid = col < n_total                                 # (1, TN)

    # is_label[c, j] == (c == labels[j]).
    row = jax.lax.broadcasted_iota(jnp.int32, (c, tn), 0)
    is_label = row == labels                               # (C, TN)

    # Numerically stable softmax pieces along the class (sublane) axis.
    m = jnp.max(xt, axis=0, keepdims=True)                 # (1, TN)   [XLU]
    z = xt - m
    ez = jnp.exp(z)                                        # (C, TN)   [EUP]
    denom = jnp.sum(ez, axis=0, keepdims=True)             # (1, TN)   [XLU]

    # CE_j = log(sum_c exp(z_cj)) - z[label_j, j]   (no one-hot / log_softmax tile)
    z_label = jnp.sum(jnp.where(is_label, z, 0.0), axis=0, keepdims=True)
    ce = jnp.log(denom) - z_label                           # (1, TN)

    # RCE_j = -log(1e-4) * sum_{c != label} clip(softmax[c], 1e-7, 1)
    #       = -log(1e-4) * (sum_c clip(softmax[c]) - clip(softmax[label]))
    inv_denom = pl.reciprocal(denom, approx=False)          # exact: RCE parity
    clip_sum = jnp.sum(jnp.clip(ez * inv_denom, 1e-7, 1.0), axis=0, keepdims=True)
    sm_label = jnp.clip(jnp.exp(z_label) * inv_denom, 1e-7, 1.0)
    off_label = clip_sum - sm_label                          # (1, TN)

    # alpha, beta and -log(1e-4) are folded in; invalid lanes zeroed BEFORE the
    # vector accumulation so padded-tile garbage (even Inf/NaN) never leaks in.
    contrib = jnp.where(valid, alpha * ce + rce_scale * off_label, 0.0)

    @pl.when(pid == 0)
    def _():
        acc_ref[...] = jnp.zeros_like(acc_ref)

    acc_ref[...] += contrib

    @pl.when(pid == last)
    def _():
        # Single deferred cross-lane reduce; 1/N of both batch means applied once.
        out_ref[0, 0] = jnp.sum(acc_ref[...]) * (1.0 / n_total)


def sce_loss(pred, labels, *, alpha, beta, num_classes, tile_n=16384):
    """SCELoss forward.

    pred:   (N, C) logits, f32 or bf16, native row-major layout (no transpose
            is materialized anywhere).
    labels: (N,) integer class indices.  Any int dtype is accepted and upcast
            in-kernel; int8 (num_classes <= 127) shaves ~7% HBM traffic.
            NOTE: labels must lie in [0, num_classes).  Out-of-range labels do
            NOT raise (unlike torch.nn.functional.cross_entropy); they yield
            finite but unspecified per-sample contributions.
    """
    n, c = pred.shape
    assert c == num_classes, "pred class dim must equal num_classes"

    labels2d = labels.reshape(1, n)          # lane-dense row, caller's dtype kept

    if n <= tile_n:
        tn = n                               # full dims: always a legal block
    else:
        tn = tile_n
        assert tn % 128 == 0, "tile_n must be a multiple of 128 when tiling"
    grid = (pl.cdiv(n, tn),)

    # beta * (-log(clip_min)) with the clamp value rounded to f32 like torch/jnp.
    rce_scale = float(beta) * float(-np.log(np.float32(1e-4)))

    out = pl.pallas_call(
        functools.partial(
            _sce_kernel,
            n_total=n,
            alpha=float(alpha),
            rce_scale=rce_scale,
        ),
        out_shape=jax.ShapeDtypeStruct((1, 1), jnp.float32),
        grid=grid,
        in_specs=[
            pl.BlockSpec((tn, c), lambda i: (i, 0)),   # logits tile, native layout
            pl.BlockSpec((1, tn), lambda i: (0, i)),   # labels tile (1, TN)
        ],
        out_specs=pl.BlockSpec((1, 1), lambda i: (0, 0), memory_space=pltpu.SMEM),
        scratch_shapes=[pltpu.VMEM((1, tn), jnp.float32)],   # resident accumulator
        compiler_params=pltpu.CompilerParams(
            dimension_semantics=("arbitrary",),        # accumulator axis
            vmem_limit_bytes=48 * 1024 * 1024,
        ),
    )(pred, labels2d)
    return out[0, 0]


if __name__ == "__main__":
    num_classes = 10
    alpha, beta = 0.1, 1.0

    def reference(pred, labels):
        pred = pred.astype(jnp.float32)
        lsm = jax.nn.log_softmax(pred, axis=1)
        oh = jax.nn.one_hot(labels, num_classes, dtype=jnp.float32)
        ce = -jnp.mean(jnp.sum(oh * lsm, axis=1))
        p = jnp.clip(jax.nn.softmax(pred, axis=1), 1e-7, 1.0)
        rce = -jnp.sum(p * jnp.log(jnp.clip(oh, 1e-4, 1.0)), axis=1)
        return alpha * ce + beta * jnp.mean(rce)

    # Case 1: small single-tile f32 problem (matches the module's default sizes).
    key = jax.random.PRNGKey(0)
    k_pred, k_lab = jax.random.split(key)
    batch = 8
    pred = jax.random.normal(k_pred, (batch, num_classes), dtype=jnp.float32)
    labels = jax.random.randint(k_lab, (batch,), 0, num_classes, dtype=jnp.int32)

    loss = sce_loss(pred, labels, alpha=alpha, beta=beta, num_classes=num_classes)
    loss = jax.block_until_ready(loss)
    ref = reference(pred, labels)
    assert jnp.allclose(loss, ref, rtol=1e-5, atol=1e-5), (loss, ref)

    # Case 2: multi-tile grid with a partial last tile + bf16 logits
    # (exercises the masking path and the reduced-HBM dtype path).
    k2p, k2l = jax.random.split(jax.random.PRNGKey(1))
    batch2 = 300
    pred2 = jax.random.normal(k2p, (batch2, num_classes),
                              dtype=jnp.float32).astype(jnp.bfloat16)
    labels2 = jax.random.randint(k2l, (batch2,), 0, num_classes, dtype=jnp.int32)

    loss2 = sce_loss(pred2, labels2, alpha=alpha, beta=beta,
                     num_classes=num_classes, tile_n=128)
    loss2 = jax.block_until_ready(loss2)
    ref2 = reference(pred2, labels2)   # reference upcasts the same bf16 values
    assert jnp.allclose(loss2, ref2, rtol=5e-5, atol=5e-5), (loss2, ref2)

    print("KERNEL_OK")
</pallas_src>

<mosaic_0001>
module attributes {stable_mosaic.version = 11 : i64} {
  func.func @_sce_kernel(%arg0: i32, %arg1: memref<8x10xf32, #tpu.memory_space<vmem>>, %arg2: memref<1x8xi32, #tpu.memory_space<vmem>>, %arg3: memref<1x1xf32, #tpu.memory_space<smem>>, %arg4: memref<1x8xf32, #tpu.memory_space<vmem>>) attributes {dimension_semantics = [#tpu.dimension_semantics<arbitrary>], iteration_bounds = array<i64: 1>, scalar_prefetch = 0 : i64, scratch_operands = 1 : i64, tpu.core_type = #tpu.core_type<tc>, window_params = [{transform_indices = @transform_0, window_bounds = array<i64: 8, 10>}, {transform_indices = @transform_1, window_bounds = array<i64: 1, 8>}, {transform_indices = @transform_2, window_bounds = array<i64: 1, 1>}]} {
    %c0 = arith.constant 0 : index
    %c0_0 = arith.constant 0 : index
    %0 = vector.load %arg1[%c0, %c0_0] : memref<8x10xf32, #tpu.memory_space<vmem>>, vector<8x10xf32>
    %c0_1 = arith.constant 0 : index
    %c0_2 = arith.constant 0 : index
    %1 = vector.load %arg2[%c0_1, %c0_2] : memref<1x8xi32, #tpu.memory_space<vmem>>, vector<1x8xi32>
    %2 = tpu.iota {dimensions = array<i32: 0>} : vector<10x10xi32>
    %3 = tpu.iota {dimensions = array<i32: 1>} : vector<10x10xi32>
    %4 = arith.cmpi eq, %2, %3 : vector<10x10xi32>
    %5 = arith.extui %4 : vector<10x10xi1> to vector<10x10xi32>
    %6 = arith.sitofp %5 : vector<10x10xi32> to vector<10x10xf32>
    %cst = arith.constant dense<0.000000e+00> : vector<10x8xf32>
    %7 = tpu.matmul %6, %0, %cst {dimension_numbers = #tpu.dot_dimension_numbers<[1], [1], [0], [0], [0, 0, 1, 0], [], []>, precision = #tpu.contract_precision<fp32>} : vector<10x10xf32>, vector<8x10xf32>, vector<10x8xf32> -> vector<10x8xf32>
    %c8_i32 = arith.constant 8 : i32
    %8 = arith.muli %arg0, %c8_i32 : i32
    %9 = tpu.iota {dimensions = array<i32: 1>} : vector<1x8xi32>
    %10 = vector.broadcast %8 : i32 to vector<1x8xi32>
    %11 = arith.addi %10, %9 : vector<1x8xi32>
    %c8_i32_3 = arith.constant 8 : i32
    %12 = vector.broadcast %c8_i32_3 : i32 to vector<1x8xi32>
    %13 = arith.cmpi slt, %11, %12 : vector<1x8xi32>
    %14 = tpu.iota {dimensions = array<i32: 0>} : vector<10x8xi32>
    %15 = vector.broadcast %1 : vector<1x8xi32> to vector<10x8xi32>
    %16 = arith.cmpi eq, %14, %15 : vector<10x8xi32>
    %cst_4 = arith.constant dense<0xFF800000> : vector<8xf32>
    %17 = vector.multi_reduction <maximumf>, %7, %cst_4 [0] : vector<10x8xf32> to vector<8xf32>
    %18 = vector.shape_cast %17 : vector<8xf32> to vector<1x8xf32>
    %19 = vector.broadcast %18 : vector<1x8xf32> to vector<10x8xf32>
    %20 = arith.subf %7, %19 : vector<10x8xf32>
    %21 = math.exp %20 : vector<10x8xf32>
    %cst_5 = arith.constant dense<0.000000e+00> : vector<8xf32>
    %22 = vector.multi_reduction <add>, %21, %cst_5 [0] : vector<10x8xf32> to vector<8xf32>
    %23 = vector.shape_cast %22 : vector<8xf32> to vector<1x8xf32>
    %cst_6 = arith.constant 0.000000e+00 : f32
    %24 = vector.broadcast %cst_6 : f32 to vector<10x8xf32>
    %25 = arith.select %16, %20, %24 : vector<10x8xi1>, vector<10x8xf32>
    %cst_7 = arith.constant dense<0.000000e+00> : vector<8xf32>
    %26 = vector.multi_reduction <add>, %25, %cst_7 [0] : vector<10x8xf32> to vector<8xf32>
    %27 = vector.shape_cast %26 : vector<8xf32> to vector<1x8xf32>
    %28 = math.log %23 : vector<1x8xf32>
    %29 = arith.subf %28, %27 : vector<1x8xf32>
    %30 = tpu.reciprocal %23 : vector<1x8xf32> -> vector<1x8xf32>
    %31 = vector.broadcast %30 : vector<1x8xf32> to vector<10x8xf32>
    %32 = arith.mulf %21, %31 : vector<10x8xf32>
    %cst_8 = arith.constant 1.000000e-07 : f32
    %cst_9 = arith.constant 1.000000e+00 : f32
    %33 = vector.broadcast %cst_8 : f32 to vector<10x8xf32>
    %34 = arith.maximumf %33, %32 : vector<10x8xf32>
    %35 = vector.broadcast %cst_9 : f32 to vector<10x8xf32>
    %36 = arith.minimumf %35, %34 : vector<10x8xf32>
    %cst_10 = arith.constant dense<0.000000e+00> : vector<8xf32>
    %37 = vector.multi_reduction <add>, %36, %cst_10 [0] : vector<10x8xf32> to vector<8xf32>
    %38 = vector.shape_cast %37 : vector<8xf32> to vector<1x8xf32>
    %39 = math.exp %27 : vector<1x8xf32>
    %40 = arith.mulf %39, %30 : vector<1x8xf32>
    %cst_11 = arith.constant 1.000000e-07 : f32
    %cst_12 = arith.constant 1.000000e+00 : f32
    %41 = vector.broadcast %cst_11 : f32 to vector<1x8xf32>
    %42 = arith.maximumf %41, %40 : vector<1x8xf32>
    %43 = vector.broadcast %cst_12 : f32 to vector<1x8xf32>
    %44 = arith.minimumf %43, %42 : vector<1x8xf32>
    %45 = arith.subf %38, %44 : vector<1x8xf32>
    %cst_13 = arith.constant 1.000000e-01 : f32
    %46 = vector.broadcast %cst_13 : f32 to vector<1x8xf32>
    %47 = arith.mulf %46, %29 : vector<1x8xf32>
    %cst_14 = arith.constant 9.21034049 : f32
    %48 = vector.broadcast %cst_14 : f32 to vector<1x8xf32>
    %49 = arith.mulf %48, %45 : vector<1x8xf32>
    %50 = arith.addf %47, %49 : vector<1x8xf32>
    %cst_15 = arith.constant 0.000000e+00 : f32
    %51 = vector.broadcast %cst_15 : f32 to vector<1x8xf32>
    %52 = arith.select %13, %50, %51 : vector<1x8xi1>, vector<1x8xf32>
    %c0_i32 = arith.constant 0 : i32
    %53 = arith.cmpi eq, %arg0, %c0_i32 : i32
    %54 = arith.extui %53 : i1 to i32
    %c0_i32_16 = arith.constant 0 : i32
    %55 = arith.cmpi ne, %54, %c0_i32_16 : i32
    scf.if %55 {
      %cst_23 = arith.constant 0.000000e+00 : f32
      %62 = vector.broadcast %cst_23 : f32 to vector<1x8xf32>
      %c0_24 = arith.constant 0 : index
      %c0_25 = arith.constant 0 : index
      %63 = vector.load %arg4[%c0_24, %c0_25] : memref<1x8xf32, #tpu.memory_space<vmem>>, vector<1x8xf32>
      tpu.vector_store %arg4[%c0_24, %c0_25], %62 {strides = array<i32>} : memref<1x8xf32, #tpu.memory_space<vmem>>, vector<1x8xf32>,
    } else {
    }
    %c0_17 = arith.constant 0 : index
    %c0_18 = arith.constant 0 : index
    %56 = vector.load %arg4[%c0_17, %c0_18] : memref<1x8xf32, #tpu.memory_space<vmem>>, vector<1x8xf32>
    %57 = arith.addf %56, %52 : vector<1x8xf32>
    %c0_19 = arith.constant 0 : index
    %c0_20 = arith.constant 0 : index
    %58 = vector.load %arg4[%c0_19, %c0_20] : memref<1x8xf32, #tpu.memory_space<vmem>>, vector<1x8xf32>
    tpu.vector_store %arg4[%c0_19, %c0_20], %57 {strides = array<i32>} : memref<1x8xf32, #tpu.memory_space<vmem>>, vector<1x8xf32>,
    %c0_i32_21 = arith.constant 0 : i32
    %59 = arith.cmpi eq, %arg0, %c0_i32_21 : i32
    %60 = arith.extui %59 : i1 to i32
    %c0_i32_22 = arith.constant 0 : i32
    %61 = arith.cmpi ne, %60, %c0_i32_22 : i32
    scf.if %61 {
      %c0_23 = arith.constant 0 : index
      %c0_24 = arith.constant 0 : index
      %62 = vector.load %arg4[%c0_23, %c0_24] : memref<1x8xf32, #tpu.memory_space<vmem>>, vector<1x8xf32>
      %63 = vector.shape_cast %62 : vector<1x8xf32> to vector<1x1x8xf32>
      %cst_25 = arith.constant dense<0.000000e+00> : vector<1xf32>
      %64 = vector.multi_reduction <add>, %63, %cst_25 [1, 2] : vector<1x1x8xf32> to vector<1xf32>
      %65 = vector.shape_cast %64 : vector<1xf32> to vector<1x1x1xf32>
      %66 = vector.extract %65[0, 0, 0] : f32 from vector<1x1x1xf32>
      %cst_26 = arith.constant 1.250000e-01 : f32
      %67 = arith.mulf %66, %cst_26 : f32
      %c0_27 = arith.constant 0 : index
      %c0_28 = arith.constant 0 : index
      %68 = memref.load %arg3[%c0_27, %c0_28] : memref<1x1xf32, #tpu.memory_space<smem>>
      memref.store %67, %arg3[%c0_27, %c0_28] : memref<1x1xf32, #tpu.memory_space<smem>>
    } else {
    }
    return
  }
  func.func @transform_0(%arg0: i32) -> (i32, i32) {
    %c0_i32 = arith.constant 0 : i32
    %c0_i32_0 = arith.constant 0 : i32
    return %arg0, %c0_i32 : i32, i32
  }
  func.func @transform_1(%arg0: i32) -> (i32, i32) {
    %c0_i32 = arith.constant 0 : i32
    %c0_i32_0 = arith.constant 0 : i32
    return %c0_i32, %arg0 : i32, i32
  }
  func.func @transform_2(%arg0: i32) -> (i32, i32) {
    %c0_i32 = arith.constant 0 : i32
    %c0_i32_0 = arith.constant 0 : i32
    %c0_i32_1 = arith.constant 0 : i32
    return %c0_i32, %c0_i32_0 : i32, i32
  }
}

</mosaic_0001>

<bundles_post_ra>
// kernel: tpu_custom_call.1
= control target key start
LH: loop header
LB: loop body
LE: loop exit
PB: predicated region body
PF: predicated region fallthrough
CT: control target
= control target key end

     0   :  { %7 = vsyncpa [#allocation4], 0  ;;  %s850_s0 = inlined_call_operand.hbm [shape: f32[8,10], index: 0, kind: input, shape index: {}]   ;;  %s851_s1 = inlined_call_operand.vmem [shape: s32[1,8], index: 1, kind: input, shape index: {}]   ;;  %s852_s2 = inlined_call_operand.hbm [shape: f32[1,1], index: 2, kind: output, shape index: {}]  }
   0x1   :  { %8 = vsyncpa [#allocation5], 0  ;;  %s771_s9 = smov [#allocation3]   ;;  %s735_s13 = scalar_lea.hbm %s850_s0, 128 }
   0x2   :  { %s15_s10 = sshll.u32 %s771_s9, 4  ;;  %p736_p0 = scmp.ne.s32.totalorder %s850_s0, %s735_s13  ;;  %s16_s10 = int_to_ptr.vmem [resolvable:$true] %s15_s10 }
   0x3   :  { %p739_p1 = scmp.lt.u32.totalorder %s735_s13, %s850_s0 }
   0x5   :  { %p741_p2 = pnand %p739_p1, %p736_p0 }
   0x7   :  { %744 = shalt.err (!%p741_p2)
}
   0x8   :  { %s745_s18 = scalar_lea.vmem %s16_s10, 128  ;;  %p750_p4 = scmp.lt.s32.totalorder %s16_s10, %s16_s10 }
   0x9   :  { %p746_p3 = scmp.ne.s32.totalorder %s16_s10, %s745_s18  ;;  %p751_p5 = scmp.lt.s32.totalorder %s745_s18, %s745_s18 }
   0xb   :  { %p752_p6 = por %p751_p5, %p750_p4 }
   0xd   :  { %p753_p7 = pnand %p752_p6, %p746_p3 }
   0xf   :  { %756 = shalt.err (!%p753_p7)
}
  0x10   :  { %18 = dma.hbm_to_vmem [thread:$0]  %s850_s0, 128, %s16_s10, [#allocation4]  }
  0x11   :  { %767 = dma.done.wait [#allocation4], 128  }
  0x12   :  { %768 = vsyncadd [#allocation4], 4294967168  ;;  %v26_v0 = vlaneseq  ;;  %vm37_vm0 = vcmask 80896   ;;  %v772_v4 = vmov 0.0   ;;  %v24_v7 = vld [vmem:[#allocation3] sm:$0xff]  ;;  %vm616_vm3 = vcmask 57344  }
  0x13   :  { %v45_v10 = vsel %vm37_vm0, %v24_v7, 0  ;;  %617 = vst.msk [vmem:[#allocation2] sm:$0x1] %vm616_vm3, %v772_v4  ;;  %vm548_vm4 = vcmask 58368   ;;  %vm546_vm5 = vcmask 64512   ;;  %s757_s25 = scalar_lea.hbm %s852_s2, 16 }
  0x14   :  { %v801_v1 = vshrl.u32 %v26_v0, 7  ;;  %v803_v2 = vand.u32 127, %v26_v0  ;;  %v48_v12 = vand.u32 4294901760, %v45_v10  ;;  %v661_v37 = vld [vmem:[%s851_s1] ss:$0 sm:$0xff]  ;;  %p758_p8 = scmp.ne.s32.totalorder %s852_s2, %s757_s25  ;;  %p761_p9 = scmp.lt.u32.totalorder %s757_s25, %s852_s2 }
  0x16   :  { %vm31_vm1 = vcmp.eq.s32.totalorder %v801_v1, %v803_v2  ;;  %v808_v3 = vadd.s32 8, %v801_v1  ;;  %695 = vmatprep.subr.mxu0 %v48_v12  ;;  %680 = vmatprep.subr.mxu1 %v48_v12  ;;  %v135_v17 = vsub.f32 %v45_v10, %v48_v12  ;;  %vm544_vm6 = vcmp.eq.s32.totalorder %v801_v1, %v661_v37  ;;  %p763_p10 = pnand %p761_p9, %p758_p8 }
  0x17   :  { %v653_v5 = vsel %vm31_vm1, 1.0, %v772_v4  ;;  %696 = vmatpush3.xpose.msra.mxu0 %v48_v12  ;;  %681 = vmatpush3.xpose.msra.mxu1 %v48_v12  ;;  %vm539_vm8 = vcmp.lt.s32.totalorder %v803_v2, 8 }
  0x18   :  { %v39_v6 = vsel %vm37_vm0, %v653_v5, 0  ;;  %vm32_vm2 = vcmp.eq.s32.totalorder %v808_v3, %v803_v2  ;;  %v136_v20 = vand.u32 4294901760, %v135_v17  ;;  %vm545_vm7 = vcmp.eq.s32.totalorder %v808_v3, %v661_v37 }
  0x19   :  { %v114_v8 = vsub.f32 %v39_v6, %v39_v6  ;;  %v654_v9 = vsel %vm32_vm2, 1.0, %v772_v4 }
  0x1a   :  { %v42_v11 = vsel %vm37_vm0, %v654_v9, 0  ;;  %v137_v22 = vsub.f32 %v135_v17, %v136_v20  ;;  %700 = vmatprep.subr.mxu0 %v136_v20 }
  0x1b   :  { %v115_v13 = vand.u32 4294901760, %v114_v8  ;;  %v124_v14 = vsub.f32 %v42_v11, %v42_v11 }
  0x1c   :  { %v138_v23 = vand.u32 4294901760, %v137_v22 }
  0x1d   :  { %v125_v15 = vand.u32 4294901760, %v124_v14  ;;  %v116_v16 = vsub.f32 %v114_v8, %v115_v13  ;;  %697 = vmatprep.mubr.f32.mxu0 %v115_v13 }
  0x1e   :  { %685 = vmatprep.subr.mxu1 %v138_v23 }
  0x1f   :  { %v117_v18 = vand.u32 4294901760, %v116_v16  ;;  %v126_v19 = vsub.f32 %v124_v14, %v125_v15  ;;  %698 = vmatmul.mubr.f32.vlgmr.msra.gmra.mrb[0].mxu0 %v125_v15 }
  0x20   :  { %702 = vmatprep.mubr.msk.f32.mxu0 %vm37_vm0, %v653_v5  ;;  %701 = vmatpush3.xpose.msra.mxu0 %v136_v20 }
  0x21   :  { %682 = vmatprep.mubr.f32.mxu1 %v117_v18  ;;  %v127_v21 = vand.u32 4294901760, %v126_v19  ;;  %705 = vmatprep.subr.mxu0 %v48_v12 }
  0x23   :  { %683 = vmatmul.mubr.f32.vlgmr.msra.gmra.mrb[0].mxu1 %v127_v21 }
  0x24   :  { %687 = vmatprep.mubr.msk.f32.mxu1 %vm37_vm0, %v653_v5  ;;  %686 = vmatpush3.xpose.msra.mxu1 %v138_v23 }
  0x25   :  { %690 = vmatprep.subr.mxu1 %v135_v17 }
  0x27   :  { %703 = vmatmul.mubr.msk.f32.vlgmr.msra.gmra.mrb[0].mxu0 %vm37_vm0, %v654_v9 }
  0x28   :  { %706 = vmatpush3.xpose.msra.mxu0 %v48_v12  ;;  %707 = vmatprep.mubr.msk.f32.mxu0 %vm37_vm0, %v653_v5 }
  0x2b   :  { %688 = vmatmul.mubr.msk.f32.vlgmr.msra.gmra.mrb[0].mxu1 %vm37_vm0, %v654_v9 }
  0x2c   :  { %691 = vmatpush3.xpose.msra.mxu1 %v135_v17  ;;  %692 = vmatprep.mubr.f32.mxu1 %v114_v8 }
  0x2f   :  { %708 = vmatmul.mubr.msk.f32.vlgmr.msra.gmra.mrb[0].mxu0 %vm37_vm0, %v654_v9 }
  0x33   :  { %693 = vmatmul.mubr.f32.vlgmr.msra.gmra.mrb[0].mxu1 %v124_v14 }
 0x102   :  { %v709_v24 = vpop.f32.mrb[0].mxu0 }
 0x103   :  { %v526_v25 = vpop.f32.mrb[1].mxu0 }
 0x106   :  { %v694_v26 = vpop.f32.mrb[0].mxu1 }
 0x107   :  { %v710_v27 = vadd.f32 %v709_v24, %v694_v26  ;;  %v285_v28 = vpop.f32.mrb[1].mxu1 }
 0x108   :  { %v711_v29 = vadd.f32 %v526_v25, %v285_v28 }
 0x109   :  { %v549_v30 = vsel %vm548_vm4, %v710_v27, -inf }
 0x10a   :  { %v547_v31 = vsel %vm546_vm5, %v711_v29, -inf }
 0x10b   :  { %v550_v32 = vmax.f32 %v547_v31, %v549_v30  ;;  %v618_v31 = vld [vmem:[#allocation2] sm:$0x1] }
 0x10d   :  { %v551_v33 = vrot.slane %v550_v32, 4 }
 0x10f   :  { %v552_v34 = vmax.f32 %v550_v32, %v551_v33 }
 0x111   :  { %v553_v35 = vrot.slane %v552_v34, 2 }
 0x113   :  { %v554_v36 = vmax.f32 %v552_v34, %v553_v35 }
 0x115   :  { %v555_v38 = vrot.slane %v554_v36, 1 }
 0x117   :  { %v556_v39 = vmax.f32 %v554_v36, %v555_v38 }
 0x119   :  { %v557_v40 = vsub.f32 %v711_v29, %v556_v39  ;;  %v558_v41 = vsub.f32 %v710_v27, %v556_v39 }
 0x11b   :  { %v559_v42 = vmul.f32 1.442695, %v557_v40  ;;  %v561_v43 = vmul.f32 1.442695, %v558_v41  ;;  %v572_v44 = vsel %vm544_vm6, %v557_v40, 0.0  ;;  %v573_v45 = vsel %vm545_vm7, %v558_v41, 0.0 }
 0x11c   :  { %v574_v46 = vsel %vm546_vm5, %v572_v44, 0.0  ;;  %v575_v47 = vsel %vm548_vm4, %v573_v45, 0.0 }
 0x11d   :  { %725 = vpow2.f32 %v559_v42  ;;  %v576_v48 = vadd.f32 %v575_v47, %v574_v46 }
 0x11e   :  { %727 = vpow2.f32 %v561_v43 }
 0x11f   :  { %v577_v49 = vrot.slane %v576_v48, 4 }
 0x121   :  { %v578_v50 = vadd.f32 %v577_v49, %v576_v48 }
 0x123   :  { %v579_v51 = vrot.slane %v578_v50, 2 }
 0x125   :  { %v580_v53 = vadd.f32 %v579_v51, %v578_v50 }
 0x127   :  { %v726_v52 = vpop.eup %725  ;;  %v581_v58 = vrot.slane %v580_v53, 1 }
 0x128   :  { %v728_v54 = vpop.eup %727  ;;  %v563_v55 = vsel %vm546_vm5, %v726_v52, 0.0 }
 0x129   :  { %v564_v56 = vsel %vm548_vm4, %v728_v54, 0.0  ;;  %v582_v61 = vadd.f32 %v581_v58, %v580_v53 }
 0x12a   :  { %v565_v57 = vadd.f32 %v564_v56, %v563_v55 }
 0x12b   :  { %v602_v0 = vmul.f32 1.442695, %v582_v61 }
 0x12c   :  { %v566_v59 = vrot.slane %v565_v57, 4 }
 0x12d   :  { %729 = vpow2.f32 %v602_v0 }
 0x12e   :  { %v567_v60 = vadd.f32 %v566_v59, %v565_v57 }
 0x130   :  { %v568_v62 = vrot.slane %v567_v60, 2 }
 0x132   :  { %v569_v63 = vadd.f32 %v568_v62, %v567_v60 }
 0x134   :  { %v570_v1 = vrot.slane %v569_v63, 1 }
 0x136   :  { %v571_v3 = vadd.f32 %v570_v1, %v569_v63 }
 0x137   :  { %v730_v4 = vpop.eup %729 }
 0x138   :  { %731 = vlog2.f32 %v571_v3 }
 0x139   :  { %733 = vrcp.f32 %v571_v3 }
 0x142   :  { %v732_v5 = vpop.eup %731 }
 0x143   :  { %v734_v6 = vpop.eup %733  ;;  %v584_v7 = vmul.f32 0.6931472, %v732_v5 }
 0x144   :  { %v587_v8 = vmul.f32 %v734_v6, %v726_v52  ;;  %v588_v9 = vmul.f32 %v734_v6, %v728_v54  ;;  %v604_v10 = vmul.f32 %v734_v6, %v730_v4 }
 0x145   :  { %v585_v11 = vsub.f32 %v584_v7, %v582_v61 }
 0x146   :  { %v589_v12 = vmax.f32 %v587_v8, 1e-07  ;;  %v590_v13 = vmax.f32 %v588_v9, 1e-07  ;;  %v605_v23 = vmax.f32 %v604_v10, 1e-07 }
 0x147   :  { %v608_v28 = vmul.f32 0.1, %v585_v11 }
 0x148   :  { %v591_v14 = vmin.f32 %v589_v12, 1.0  ;;  %v592_v15 = vmin.f32 %v590_v13, 1.0  ;;  %v606_v26 = vmin.f32 %v605_v23, 1.0 }
 0x14a   :  { %v593_v16 = vsel %vm546_vm5, %v591_v14, 0.0  ;;  %v594_v17 = vsel %vm548_vm4, %v592_v15, 0.0 }
 0x14b   :  { %v595_v18 = vadd.f32 %v594_v17, %v593_v16 }
 0x14d   :  { %v596_v19 = vrot.slane %v595_v18, 4 }
 0x14f   :  { %v597_v20 = vadd.f32 %v596_v19, %v595_v18 }
 0x151   :  { %v598_v21 = vrot.slane %v597_v20, 2 }
 0x153   :  { %v599_v22 = vadd.f32 %v598_v21, %v597_v20 }
 0x155   :  { %v600_v24 = vrot.slane %v599_v22, 1 }
 0x157   :  { %v601_v25 = vadd.f32 %v600_v24, %v599_v22 }
 0x159   :  { %v607_v27 = vsub.f32 %v601_v25, %v606_v26 }
 0x15b   :  { %v609_v29 = vmul.f32 9.2103405, %v607_v27 }
 0x15d   :  { %v610_v30 = vadd.f32 %v609_v29, %v608_v28 }
 0x15f   :  { %v611_v32 = vsel %vm539_vm8, %v610_v30, 0.0 }
 0x160   :  { %v619_v33 = vadd.f32 %v618_v31, %v611_v32 }
 0x162   :  { %621 = vst.msk [vmem:[#allocation2] sm:$0x1] %vm616_vm3, %v619_v33 }
 0x169   :  { %v625_v34 = vld [vmem:[#allocation2] sm:$0x1] }
 0x16a   :  { %v626_v35 = vsel %vm616_vm3, %v625_v34, 0.0 }
 0x16b   :  { %627 = vadd.xlane.f32.xlu0 %v626_v35 }
 0x1f8   :  { %v628_v36 = vpop.xlane.xlu0 %627 }
 0x1f9   :  { %v629_v37 = vrot.slane %v628_v36, 4 }
 0x1fb   :  { %v630_v38 = vadd.f32 %v629_v37, %v628_v36 }
 0x1fd   :  { %v631_v39 = vrot.slane %v630_v38, 2 }
 0x1ff   :  { %v632_v40 = vadd.f32 %v631_v39, %v630_v38 }
 0x201   :  { %v633_v41 = vrot.slane %v632_v40, 1 }
 0x203   :  { %v634_v42 = vadd.f32 %v633_v41, %v632_v40 }
 0x205   :  { %720 = vpush %v634_v42 }
 0x236   :  { %s721_s1 = spop %720 }
 0x237   :  { %s636_s22 = smul.f32 0.125, %s721_s1 }
 0x239   :  { %638 = sst [smem:[#allocation6]] %s636_s22 }
 0x23a   :  { %766 = shalt.err (!%p763_p10)
}
 0x23b   :  { %s773_s30 = smov [#allocation6]  }
 0x23c   :  { %646 = dma.smem_to_hbm %s773_s30, 16, %s852_s2, [#allocation5]  }
 0x23d   :  { %769 = dma.done.wait [#allocation5], 16  }
 0x23e   :  { %770 = vsyncadd [#allocation5], 4294967280 }
 0x23f   :  { %650 = sfence }
 0x240   :  { %651 = vsyncpa [#allocation4], 1 }
 0x241   :  { %652 = vsyncpa [#allocation5], 1 }

</bundles_post_ra>
